<compile_context>
chip_gen: v6e
topology: v6e:2x2x1
jax: 0.10.0
libtpu: 0.0.40
codegen_flags: <defaults>
</compile_context>

<pallas_src>
import math
import jax
import jax.numpy as jnp
from jax.experimental import pallas as pl
from jax.experimental.pallas import tpu as pltpu

# ---- layer geometry ---------------------------------------------------------
# Each layer's weight (out, in) is packed row-wise into one
# (PACK_ROWS, PACK_COLS) f32 buffer; the bias sits in column `in_dim` of the
# same rows.  Row starts are 8-sublane aligned so in-kernel ref slices never
# cross an (8,128) tile boundary.
LAYER_DEFS = (
    # (row_start, out_dim, in_dim)
    (0, 10, 4),
    (16, 20, 10),
    (40, 10, 20),
    (56, 5, 10),
    (72, 1, 5),
)
PACK_ROWS = 80     # 8-aligned row blocks, padded to a multiple of 8 sublanes
PACK_COLS = 128    # 21 used cols, padded to the 128-lane width
LANE = 128


def policy_kernel(obs_ref, u_ref, params_ref, out_ref):
    # obs_ref    : (4, TILE_B)        observations, batch along lanes
    # u_ref      : (1, TILE_B)        U[0,1) randoms for the Bernoulli draw
    # params_ref : (80, 128)          all weights + biases (one DMA, resident)
    # out_ref    : (2, TILE_B)        row 0 = prob, row 1 = sampled action
    h = obs_ref[...]                         # (4, TILE_B), already f32

    n_layers = len(LAYER_DEFS)
    for li, (r0, out_dim, in_dim) in enumerate(LAYER_DEFS):
        # Direct ref slices: r0 is 8-aligned -> plain sublane-offset loads.
        w = params_ref[r0:r0 + out_dim, 0:in_dim]             # (out, in)
        b = params_ref[r0:r0 + out_dim, in_dim:in_dim + 1]    # (out, 1)
        # Tiny contraction on the VPU: unrolled broadcast-MAC over K <= 20.
        y = w[:, 0:1] * h[0:1, :]
        for k in range(1, in_dim):
            y = y + w[:, k:k + 1] * h[k:k + 1, :]
        y = y + b
        h = jnp.maximum(y, 0.0) if li < n_layers - 1 else y

    prob = jax.nn.sigmoid(h)                                   # (1, TILE_B)
    action = (u_ref[...] < prob).astype(jnp.float32)           # Bernoulli(prob)
    out_ref[0:1, :] = prob                                     # lane-dense stores,
    out_ref[1:2, :] = action                                   # no concat temp


def init_params(key):
    """Deterministic init mimicking torch.nn.Linear default (Kaiming-uniform).

    Weights stored as (in, out), biases as (1, out) -> reference is x @ W + b.
    """
    sizes = [(4, 10), (10, 20), (20, 10), (10, 5), (5, 1)]
    params = []
    for (fan_in, fan_out) in sizes:
        key, kw, kb = jax.random.split(key, 3)
        bound = 1.0 / math.sqrt(fan_in)
        w = jax.random.uniform(kw, (fan_in, fan_out), jnp.float32, -bound, bound)
        b = jax.random.uniform(kb, (1, fan_out), jnp.float32, -bound, bound)
        params += [w, b]
    return params


def pack_params(params):
    """Pack all (in,out) weights + biases into one (80, 128) buffer in
    (out, in | bias) layout, each layer's rows starting on an 8-row boundary."""
    buf = jnp.zeros((PACK_ROWS, PACK_COLS), jnp.float32)
    for (r0, out_dim, in_dim), w, b in zip(LAYER_DEFS, params[0::2], params[1::2]):
        buf = buf.at[r0:r0 + out_dim, 0:in_dim].set(w.T)           # (out, in)
        buf = buf.at[r0:r0 + out_dim, in_dim].set(b.reshape(-1))   # bias column
    return buf


def _round_up(x, m):
    return ((x + m - 1) // m) * m


def policy_forward(observation, packed_params, rng_key, max_tile_b=512):
    B = observation.shape[0]
    # pad batch to a lane multiple
    B_pad = max(LANE, _round_up(B, LANE))
    # keep tiles small enough to stay register-resident (review: sweep 256-1024)
    tile_b = min(max_tile_b, B_pad)
    # v7x megacore: guarantee >= 2 grid steps whenever the batch can be split,
    # so ("parallel",) actually shards across both TensorCores.
    if B_pad >= 2 * LANE:
        tile_b = min(tile_b, _round_up(B_pad // 2, LANE))
    B_pad = _round_up(B_pad, tile_b)

    # lane-dense (features, batch) orientation; zero-pad the extra columns
    obs_t = jnp.zeros((4, B_pad), jnp.float32).at[:, :B].set(observation.T)
    u = jax.random.uniform(rng_key, (1, B_pad), dtype=jnp.float32)

    out = pl.pallas_call(
        policy_kernel,
        out_shape=jax.ShapeDtypeStruct((2, B_pad), jnp.float32),
        grid=(B_pad // tile_b,),
        in_specs=[
            pl.BlockSpec((4, tile_b), lambda i: (0, i)),               # obs
            pl.BlockSpec((1, tile_b), lambda i: (0, i)),               # uniforms
            pl.BlockSpec((PACK_ROWS, PACK_COLS), lambda i: (0, 0)),    # weights
        ],
        out_specs=pl.BlockSpec((2, tile_b), lambda i: (0, i)),
        compiler_params=pltpu.CompilerParams(
            dimension_semantics=("parallel",)),
    )(obs_t, u, packed_params)

    prob = out[0, :B].reshape(B, 1)
    action = out[1, :B].reshape(B, 1)
    return prob, action


def reference_forward(observation, params):
    x = observation
    for i in range(0, 8, 2):
        x = jnp.maximum(x @ params[i] + params[i + 1], 0.0)
    return jax.nn.sigmoid(x @ params[8] + params[9])


if __name__ == "__main__":
    key = jax.random.PRNGKey(0)
    key, k_obs, k_obs2, k_bern, k_bern2 = jax.random.split(key, 5)

    params = init_params(key)
    packed = pack_params(params)

    # small batch of CartPole observations (single-tile path)
    B = 8
    observation = jax.random.normal(k_obs, (B, 4), dtype=jnp.float32)
    prob, action = policy_forward(observation, packed, k_bern)
    jax.block_until_ready((prob, action))

    ref = reference_forward(observation, params)
    assert prob.shape == (B, 1) and action.shape == (B, 1)
    assert jnp.allclose(prob, ref, atol=1e-5), "prob mismatch vs reference"
    assert jnp.all((action == 0.0) | (action == 1.0)), "action not binary"

    # larger batch exercising the multi-tile (>=2 grid steps) path
    B2 = 300
    observation2 = jax.random.normal(k_obs2, (B2, 4), dtype=jnp.float32)
    prob2, action2 = policy_forward(observation2, packed, k_bern2)
    jax.block_until_ready((prob2, action2))

    ref2 = reference_forward(observation2, params)
    assert prob2.shape == (B2, 1) and action2.shape == (B2, 1)
    assert jnp.allclose(prob2, ref2, atol=1e-5), "prob mismatch vs reference (B=300)"
    assert jnp.all((action2 == 0.0) | (action2 == 1.0)), "action not binary (B=300)"

    print("KERNEL_OK")
</pallas_src>

<mosaic_0001>
module attributes {stable_mosaic.version = 11 : i64} {
  func.func @policy_kernel(%arg0: i32, %arg1: memref<4x128xf32, #tpu.memory_space<vmem>>, %arg2: memref<1x128xf32, #tpu.memory_space<vmem>>, %arg3: memref<80x128xf32, #tpu.memory_space<vmem>>, %arg4: memref<2x128xf32, #tpu.memory_space<vmem>>) attributes {dimension_semantics = [#tpu.dimension_semantics<parallel>], iteration_bounds = array<i64: 1>, scalar_prefetch = 0 : i64, scratch_operands = 0 : i64, tpu.core_type = #tpu.core_type<tc>, window_params = [{transform_indices = @transform_0, window_bounds = array<i64: 4, 128>}, {transform_indices = @transform_1, window_bounds = array<i64: 1, 128>}, {pipeline_mode = #tpu.pipeline_mode<synchronous>, transform_indices = @transform_2, window_bounds = array<i64: 80, 128>}, {transform_indices = @transform_3, window_bounds = array<i64: 2, 128>}]} {
    %c0 = arith.constant 0 : index
    %c0_0 = arith.constant 0 : index
    %0 = vector.load %arg1[%c0, %c0_0] : memref<4x128xf32, #tpu.memory_space<vmem>>, vector<4x128xf32>
    %c0_1 = arith.constant 0 : index
    %c0_2 = arith.constant 0 : index
    %1 = vector.load %arg3[%c0_1, %c0_2] : memref<80x128xf32, #tpu.memory_space<vmem>>, vector<10x4xf32>
    %c0_3 = arith.constant 0 : index
    %c4 = arith.constant 4 : index
    %2 = vector.load %arg3[%c0_3, %c4] : memref<80x128xf32, #tpu.memory_space<vmem>>, vector<10x1xf32>
    %3 = vector.extract_strided_slice %1 {offsets = [0, 0], sizes = [10, 1], strides = [1, 1]} : vector<10x4xf32> to vector<10x1xf32>
    %4 = vector.extract_strided_slice %0 {offsets = [0, 0], sizes = [1, 128], strides = [1, 1]} : vector<4x128xf32> to vector<1x128xf32>
    %5 = vector.broadcast %3 : vector<10x1xf32> to vector<10x128xf32>
    %6 = vector.broadcast %4 : vector<1x128xf32> to vector<10x128xf32>
    %7 = arith.mulf %5, %6 : vector<10x128xf32>
    %8 = vector.extract_strided_slice %1 {offsets = [0, 1], sizes = [10, 1], strides = [1, 1]} : vector<10x4xf32> to vector<10x1xf32>
    %9 = vector.extract_strided_slice %0 {offsets = [1, 0], sizes = [1, 128], strides = [1, 1]} : vector<4x128xf32> to vector<1x128xf32>
    %10 = vector.broadcast %8 : vector<10x1xf32> to vector<10x128xf32>
    %11 = vector.broadcast %9 : vector<1x128xf32> to vector<10x128xf32>
    %12 = arith.mulf %10, %11 : vector<10x128xf32>
    %13 = arith.addf %7, %12 : vector<10x128xf32>
    %14 = vector.extract_strided_slice %1 {offsets = [0, 2], sizes = [10, 1], strides = [1, 1]} : vector<10x4xf32> to vector<10x1xf32>
    %15 = vector.extract_strided_slice %0 {offsets = [2, 0], sizes = [1, 128], strides = [1, 1]} : vector<4x128xf32> to vector<1x128xf32>
    %16 = vector.broadcast %14 : vector<10x1xf32> to vector<10x128xf32>
    %17 = vector.broadcast %15 : vector<1x128xf32> to vector<10x128xf32>
    %18 = arith.mulf %16, %17 : vector<10x128xf32>
    %19 = arith.addf %13, %18 : vector<10x128xf32>
    %20 = vector.extract_strided_slice %1 {offsets = [0, 3], sizes = [10, 1], strides = [1, 1]} : vector<10x4xf32> to vector<10x1xf32>
    %21 = vector.extract_strided_slice %0 {offsets = [3, 0], sizes = [1, 128], strides = [1, 1]} : vector<4x128xf32> to vector<1x128xf32>
    %22 = vector.broadcast %20 : vector<10x1xf32> to vector<10x128xf32>
    %23 = vector.broadcast %21 : vector<1x128xf32> to vector<10x128xf32>
    %24 = arith.mulf %22, %23 : vector<10x128xf32>
    %25 = arith.addf %19, %24 : vector<10x128xf32>
    %26 = vector.broadcast %2 : vector<10x1xf32> to vector<10x128xf32>
    %27 = arith.addf %25, %26 : vector<10x128xf32>
    %cst = arith.constant 0.000000e+00 : f32
    %28 = vector.broadcast %cst : f32 to vector<10x128xf32>
    %29 = arith.maximumf %27, %28 : vector<10x128xf32>
    %c16 = arith.constant 16 : index
    %c0_4 = arith.constant 0 : index
    %30 = vector.load %arg3[%c16, %c0_4] : memref<80x128xf32, #tpu.memory_space<vmem>>, vector<20x10xf32>
    %c16_5 = arith.constant 16 : index
    %c10 = arith.constant 10 : index
    %31 = vector.load %arg3[%c16_5, %c10] : memref<80x128xf32, #tpu.memory_space<vmem>>, vector<20x1xf32>
    %32 = vector.extract_strided_slice %30 {offsets = [0, 0], sizes = [20, 1], strides = [1, 1]} : vector<20x10xf32> to vector<20x1xf32>
    %33 = vector.extract_strided_slice %29 {offsets = [0, 0], sizes = [1, 128], strides = [1, 1]} : vector<10x128xf32> to vector<1x128xf32>
    %34 = vector.broadcast %32 : vector<20x1xf32> to vector<20x128xf32>
    %35 = vector.broadcast %33 : vector<1x128xf32> to vector<20x128xf32>
    %36 = arith.mulf %34, %35 : vector<20x128xf32>
    %37 = vector.extract_strided_slice %30 {offsets = [0, 1], sizes = [20, 1], strides = [1, 1]} : vector<20x10xf32> to vector<20x1xf32>
    %38 = vector.extract_strided_slice %29 {offsets = [1, 0], sizes = [1, 128], strides = [1, 1]} : vector<10x128xf32> to vector<1x128xf32>
    %39 = vector.broadcast %37 : vector<20x1xf32> to vector<20x128xf32>
    %40 = vector.broadcast %38 : vector<1x128xf32> to vector<20x128xf32>
    %41 = arith.mulf %39, %40 : vector<20x128xf32>
    %42 = arith.addf %36, %41 : vector<20x128xf32>
    %43 = vector.extract_strided_slice %30 {offsets = [0, 2], sizes = [20, 1], strides = [1, 1]} : vector<20x10xf32> to vector<20x1xf32>
    %44 = vector.extract_strided_slice %29 {offsets = [2, 0], sizes = [1, 128], strides = [1, 1]} : vector<10x128xf32> to vector<1x128xf32>
    %45 = vector.broadcast %43 : vector<20x1xf32> to vector<20x128xf32>
    %46 = vector.broadcast %44 : vector<1x128xf32> to vector<20x128xf32>
    %47 = arith.mulf %45, %46 : vector<20x128xf32>
    %48 = arith.addf %42, %47 : vector<20x128xf32>
    %49 = vector.extract_strided_slice %30 {offsets = [0, 3], sizes = [20, 1], strides = [1, 1]} : vector<20x10xf32> to vector<20x1xf32>
    %50 = vector.extract_strided_slice %29 {offsets = [3, 0], sizes = [1, 128], strides = [1, 1]} : vector<10x128xf32> to vector<1x128xf32>
    %51 = vector.broadcast %49 : vector<20x1xf32> to vector<20x128xf32>
    %52 = vector.broadcast %50 : vector<1x128xf32> to vector<20x128xf32>
    %53 = arith.mulf %51, %52 : vector<20x128xf32>
    %54 = arith.addf %48, %53 : vector<20x128xf32>
    %55 = vector.extract_strided_slice %30 {offsets = [0, 4], sizes = [20, 1], strides = [1, 1]} : vector<20x10xf32> to vector<20x1xf32>
    %56 = vector.extract_strided_slice %29 {offsets = [4, 0], sizes = [1, 128], strides = [1, 1]} : vector<10x128xf32> to vector<1x128xf32>
    %57 = vector.broadcast %55 : vector<20x1xf32> to vector<20x128xf32>
    %58 = vector.broadcast %56 : vector<1x128xf32> to vector<20x128xf32>
    %59 = arith.mulf %57, %58 : vector<20x128xf32>
    %60 = arith.addf %54, %59 : vector<20x128xf32>
    %61 = vector.extract_strided_slice %30 {offsets = [0, 5], sizes = [20, 1], strides = [1, 1]} : vector<20x10xf32> to vector<20x1xf32>
    %62 = vector.extract_strided_slice %29 {offsets = [5, 0], sizes = [1, 128], strides = [1, 1]} : vector<10x128xf32> to vector<1x128xf32>
    %63 = vector.broadcast %61 : vector<20x1xf32> to vector<20x128xf32>
    %64 = vector.broadcast %62 : vector<1x128xf32> to vector<20x128xf32>
    %65 = arith.mulf %63, %64 : vector<20x128xf32>
    %66 = arith.addf %60, %65 : vector<20x128xf32>
    %67 = vector.extract_strided_slice %30 {offsets = [0, 6], sizes = [20, 1], strides = [1, 1]} : vector<20x10xf32> to vector<20x1xf32>
    %68 = vector.extract_strided_slice %29 {offsets = [6, 0], sizes = [1, 128], strides = [1, 1]} : vector<10x128xf32> to vector<1x128xf32>
    %69 = vector.broadcast %67 : vector<20x1xf32> to vector<20x128xf32>
    %70 = vector.broadcast %68 : vector<1x128xf32> to vector<20x128xf32>
    %71 = arith.mulf %69, %70 : vector<20x128xf32>
    %72 = arith.addf %66, %71 : vector<20x128xf32>
    %73 = vector.extract_strided_slice %30 {offsets = [0, 7], sizes = [20, 1], strides = [1, 1]} : vector<20x10xf32> to vector<20x1xf32>
    %74 = vector.extract_strided_slice %29 {offsets = [7, 0], sizes = [1, 128], strides = [1, 1]} : vector<10x128xf32> to vector<1x128xf32>
    %75 = vector.broadcast %73 : vector<20x1xf32> to vector<20x128xf32>
    %76 = vector.broadcast %74 : vector<1x128xf32> to vector<20x128xf32>
    %77 = arith.mulf %75, %76 : vector<20x128xf32>
    %78 = arith.addf %72, %77 : vector<20x128xf32>
    %79 = vector.extract_strided_slice %30 {offsets = [0, 8], sizes = [20, 1], strides = [1, 1]} : vector<20x10xf32> to vector<20x1xf32>
    %80 = vector.extract_strided_slice %29 {offsets = [8, 0], sizes = [1, 128], strides = [1, 1]} : vector<10x128xf32> to vector<1x128xf32>
    %81 = vector.broadcast %79 : vector<20x1xf32> to vector<20x128xf32>
    %82 = vector.broadcast %80 : vector<1x128xf32> to vector<20x128xf32>
    %83 = arith.mulf %81, %82 : vector<20x128xf32>
    %84 = arith.addf %78, %83 : vector<20x128xf32>
    %85 = vector.extract_strided_slice %30 {offsets = [0, 9], sizes = [20, 1], strides = [1, 1]} : vector<20x10xf32> to vector<20x1xf32>
    %86 = vector.extract_strided_slice %29 {offsets = [9, 0], sizes = [1, 128], strides = [1, 1]} : vector<10x128xf32> to vector<1x128xf32>
    %87 = vector.broadcast %85 : vector<20x1xf32> to vector<20x128xf32>
    %88 = vector.broadcast %86 : vector<1x128xf32> to vector<20x128xf32>
    %89 = arith.mulf %87, %88 : vector<20x128xf32>
    %90 = arith.addf %84, %89 : vector<20x128xf32>
    %91 = vector.broadcast %31 : vector<20x1xf32> to vector<20x128xf32>
    %92 = arith.addf %90, %91 : vector<20x128xf32>
    %cst_6 = arith.constant 0.000000e+00 : f32
    %93 = vector.broadcast %cst_6 : f32 to vector<20x128xf32>
    %94 = arith.maximumf %92, %93 : vector<20x128xf32>
    %c40 = arith.constant 40 : index
    %c0_7 = arith.constant 0 : index
    %95 = vector.load %arg3[%c40, %c0_7] : memref<80x128xf32, #tpu.memory_space<vmem>>, vector<10x20xf32>
    %c40_8 = arith.constant 40 : index
    %c20 = arith.constant 20 : index
    %96 = vector.load %arg3[%c40_8, %c20] : memref<80x128xf32, #tpu.memory_space<vmem>>, vector<10x1xf32>
    %97 = vector.extract_strided_slice %95 {offsets = [0, 0], sizes = [10, 1], strides = [1, 1]} : vector<10x20xf32> to vector<10x1xf32>
    %98 = vector.extract_strided_slice %94 {offsets = [0, 0], sizes = [1, 128], strides = [1, 1]} : vector<20x128xf32> to vector<1x128xf32>
    %99 = vector.broadcast %97 : vector<10x1xf32> to vector<10x128xf32>
    %100 = vector.broadcast %98 : vector<1x128xf32> to vector<10x128xf32>
    %101 = arith.mulf %99, %100 : vector<10x128xf32>
    %102 = vector.extract_strided_slice %95 {offsets = [0, 1], sizes = [10, 1], strides = [1, 1]} : vector<10x20xf32> to vector<10x1xf32>
    %103 = vector.extract_strided_slice %94 {offsets = [1, 0], sizes = [1, 128], strides = [1, 1]} : vector<20x128xf32> to vector<1x128xf32>
    %104 = vector.broadcast %102 : vector<10x1xf32> to vector<10x128xf32>
    %105 = vector.broadcast %103 : vector<1x128xf32> to vector<10x128xf32>
    %106 = arith.mulf %104, %105 : vector<10x128xf32>
    %107 = arith.addf %101, %106 : vector<10x128xf32>
    %108 = vector.extract_strided_slice %95 {offsets = [0, 2], sizes = [10, 1], strides = [1, 1]} : vector<10x20xf32> to vector<10x1xf32>
    %109 = vector.extract_strided_slice %94 {offsets = [2, 0], sizes = [1, 128], strides = [1, 1]} : vector<20x128xf32> to vector<1x128xf32>
    %110 = vector.broadcast %108 : vector<10x1xf32> to vector<10x128xf32>
    %111 = vector.broadcast %109 : vector<1x128xf32> to vector<10x128xf32>
    %112 = arith.mulf %110, %111 : vector<10x128xf32>
    %113 = arith.addf %107, %112 : vector<10x128xf32>
    %114 = vector.extract_strided_slice %95 {offsets = [0, 3], sizes = [10, 1], strides = [1, 1]} : vector<10x20xf32> to vector<10x1xf32>
    %115 = vector.extract_strided_slice %94 {offsets = [3, 0], sizes = [1, 128], strides = [1, 1]} : vector<20x128xf32> to vector<1x128xf32>
    %116 = vector.broadcast %114 : vector<10x1xf32> to vector<10x128xf32>
    %117 = vector.broadcast %115 : vector<1x128xf32> to vector<10x128xf32>
    %118 = arith.mulf %116, %117 : vector<10x128xf32>
    %119 = arith.addf %113, %118 : vector<10x128xf32>
    %120 = vector.extract_strided_slice %95 {offsets = [0, 4], sizes = [10, 1], strides = [1, 1]} : vector<10x20xf32> to vector<10x1xf32>
    %121 = vector.extract_strided_slice %94 {offsets = [4, 0], sizes = [1, 128], strides = [1, 1]} : vector<20x128xf32> to vector<1x128xf32>
    %122 = vector.broadcast %120 : vector<10x1xf32> to vector<10x128xf32>
    %123 = vector.broadcast %121 : vector<1x128xf32> to vector<10x128xf32>
    %124 = arith.mulf %122, %123 : vector<10x128xf32>
    %125 = arith.addf %119, %124 : vector<10x128xf32>
    %126 = vector.extract_strided_slice %95 {offsets = [0, 5], sizes = [10, 1], strides = [1, 1]} : vector<10x20xf32> to vector<10x1xf32>
    %127 = vector.extract_strided_slice %94 {offsets = [5, 0], sizes = [1, 128], strides = [1, 1]} : vector<20x128xf32> to vector<1x128xf32>
    %128 = vector.broadcast %126 : vector<10x1xf32> to vector<10x128xf32>
    %129 = vector.broadcast %127 : vector<1x128xf32> to vector<10x128xf32>
    %130 = arith.mulf %128, %129 : vector<10x128xf32>
    %131 = arith.addf %125, %130 : vector<10x128xf32>
    %132 = vector.extract_strided_slice %95 {offsets = [0, 6], sizes = [10, 1], strides = [1, 1]} : vector<10x20xf32> to vector<10x1xf32>
    %133 = vector.extract_strided_slice %94 {offsets = [6, 0], sizes = [1, 128], strides = [1, 1]} : vector<20x128xf32> to vector<1x128xf32>
    %134 = vector.broadcast %132 : vector<10x1xf32> to vector<10x128xf32>
    %135 = vector.broadcast %133 : vector<1x128xf32> to vector<10x128xf32>
    %136 = arith.mulf %134, %135 : vector<10x128xf32>
    %137 = arith.addf %131, %136 : vector<10x128xf32>
    %138 = vector.extract_strided_slice %95 {offsets = [0, 7], sizes = [10, 1], strides = [1, 1]} : vector<10x20xf32> to vector<10x1xf32>
    %139 = vector.extract_strided_slice %94 {offsets = [7, 0], sizes = [1, 128], strides = [1, 1]} : vector<20x128xf32> to vector<1x128xf32>
    %140 = vector.broadcast %138 : vector<10x1xf32> to vector<10x128xf32>
    %141 = vector.broadcast %139 : vector<1x128xf32> to vector<10x128xf32>
    %142 = arith.mulf %140, %141 : vector<10x128xf32>
    %143 = arith.addf %137, %142 : vector<10x128xf32>
    %144 = vector.extract_strided_slice %95 {offsets = [0, 8], sizes = [10, 1], strides = [1, 1]} : vector<10x20xf32> to vector<10x1xf32>
    %145 = vector.extract_strided_slice %94 {offsets = [8, 0], sizes = [1, 128], strides = [1, 1]} : vector<20x128xf32> to vector<1x128xf32>
    %146 = vector.broadcast %144 : vector<10x1xf32> to vector<10x128xf32>
    %147 = vector.broadcast %145 : vector<1x128xf32> to vector<10x128xf32>
    %148 = arith.mulf %146, %147 : vector<10x128xf32>
    %149 = arith.addf %143, %148 : vector<10x128xf32>
    %150 = vector.extract_strided_slice %95 {offsets = [0, 9], sizes = [10, 1], strides = [1, 1]} : vector<10x20xf32> to vector<10x1xf32>
    %151 = vector.extract_strided_slice %94 {offsets = [9, 0], sizes = [1, 128], strides = [1, 1]} : vector<20x128xf32> to vector<1x128xf32>
    %152 = vector.broadcast %150 : vector<10x1xf32> to vector<10x128xf32>
    %153 = vector.broadcast %151 : vector<1x128xf32> to vector<10x128xf32>
    %154 = arith.mulf %152, %153 : vector<10x128xf32>
    %155 = arith.addf %149, %154 : vector<10x128xf32>
    %156 = vector.extract_strided_slice %95 {offsets = [0, 10], sizes = [10, 1], strides = [1, 1]} : vector<10x20xf32> to vector<10x1xf32>
    %157 = vector.extract_strided_slice %94 {offsets = [10, 0], sizes = [1, 128], strides = [1, 1]} : vector<20x128xf32> to vector<1x128xf32>
    %158 = vector.broadcast %156 : vector<10x1xf32> to vector<10x128xf32>
    %159 = vector.broadcast %157 : vector<1x128xf32> to vector<10x128xf32>
    %160 = arith.mulf %158, %159 : vector<10x128xf32>
    %161 = arith.addf %155, %160 : vector<10x128xf32>
    %162 = vector.extract_strided_slice %95 {offsets = [0, 11], sizes = [10, 1], strides = [1, 1]} : vector<10x20xf32> to vector<10x1xf32>
    %163 = vector.extract_strided_slice %94 {offsets = [11, 0], sizes = [1, 128], strides = [1, 1]} : vector<20x128xf32> to vector<1x128xf32>
    %164 = vector.broadcast %162 : vector<10x1xf32> to vector<10x128xf32>
    %165 = vector.broadcast %163 : vector<1x128xf32> to vector<10x128xf32>
    %166 = arith.mulf %164, %165 : vector<10x128xf32>
    %167 = arith.addf %161, %166 : vector<10x128xf32>
    %168 = vector.extract_strided_slice %95 {offsets = [0, 12], sizes = [10, 1], strides = [1, 1]} : vector<10x20xf32> to vector<10x1xf32>
    %169 = vector.extract_strided_slice %94 {offsets = [12, 0], sizes = [1, 128], strides = [1, 1]} : vector<20x128xf32> to vector<1x128xf32>
    %170 = vector.broadcast %168 : vector<10x1xf32> to vector<10x128xf32>
    %171 = vector.broadcast %169 : vector<1x128xf32> to vector<10x128xf32>
    %172 = arith.mulf %170, %171 : vector<10x128xf32>
    %173 = arith.addf %167, %172 : vector<10x128xf32>
    %174 = vector.extract_strided_slice %95 {offsets = [0, 13], sizes = [10, 1], strides = [1, 1]} : vector<10x20xf32> to vector<10x1xf32>
    %175 = vector.extract_strided_slice %94 {offsets = [13, 0], sizes = [1, 128], strides = [1, 1]} : vector<20x128xf32> to vector<1x128xf32>
    %176 = vector.broadcast %174 : vector<10x1xf32> to vector<10x128xf32>
    %177 = vector.broadcast %175 : vector<1x128xf32> to vector<10x128xf32>
    %178 = arith.mulf %176, %177 : vector<10x128xf32>
    %179 = arith.addf %173, %178 : vector<10x128xf32>
    %180 = vector.extract_strided_slice %95 {offsets = [0, 14], sizes = [10, 1], strides = [1, 1]} : vector<10x20xf32> to vector<10x1xf32>
    %181 = vector.extract_strided_slice %94 {offsets = [14, 0], sizes = [1, 128], strides = [1, 1]} : vector<20x128xf32> to vector<1x128xf32>
    %182 = vector.broadcast %180 : vector<10x1xf32> to vector<10x128xf32>
    %183 = vector.broadcast %181 : vector<1x128xf32> to vector<10x128xf32>
    %184 = arith.mulf %182, %183 : vector<10x128xf32>
    %185 = arith.addf %179, %184 : vector<10x128xf32>
    %186 = vector.extract_strided_slice %95 {offsets = [0, 15], sizes = [10, 1], strides = [1, 1]} : vector<10x20xf32> to vector<10x1xf32>
    %187 = vector.extract_strided_slice %94 {offsets = [15, 0], sizes = [1, 128], strides = [1, 1]} : vector<20x128xf32> to vector<1x128xf32>
    %188 = vector.broadcast %186 : vector<10x1xf32> to vector<10x128xf32>
    %189 = vector.broadcast %187 : vector<1x128xf32> to vector<10x128xf32>
    %190 = arith.mulf %188, %189 : vector<10x128xf32>
    %191 = arith.addf %185, %190 : vector<10x128xf32>
    %192 = vector.extract_strided_slice %95 {offsets = [0, 16], sizes = [10, 1], strides = [1, 1]} : vector<10x20xf32> to vector<10x1xf32>
    %193 = vector.extract_strided_slice %94 {offsets = [16, 0], sizes = [1, 128], strides = [1, 1]} : vector<20x128xf32> to vector<1x128xf32>
    %194 = vector.broadcast %192 : vector<10x1xf32> to vector<10x128xf32>
    %195 = vector.broadcast %193 : vector<1x128xf32> to vector<10x128xf32>
    %196 = arith.mulf %194, %195 : vector<10x128xf32>
    %197 = arith.addf %191, %196 : vector<10x128xf32>
    %198 = vector.extract_strided_slice %95 {offsets = [0, 17], sizes = [10, 1], strides = [1, 1]} : vector<10x20xf32> to vector<10x1xf32>
    %199 = vector.extract_strided_slice %94 {offsets = [17, 0], sizes = [1, 128], strides = [1, 1]} : vector<20x128xf32> to vector<1x128xf32>
    %200 = vector.broadcast %198 : vector<10x1xf32> to vector<10x128xf32>
    %201 = vector.broadcast %199 : vector<1x128xf32> to vector<10x128xf32>
    %202 = arith.mulf %200, %201 : vector<10x128xf32>
    %203 = arith.addf %197, %202 : vector<10x128xf32>
    %204 = vector.extract_strided_slice %95 {offsets = [0, 18], sizes = [10, 1], strides = [1, 1]} : vector<10x20xf32> to vector<10x1xf32>
    %205 = vector.extract_strided_slice %94 {offsets = [18, 0], sizes = [1, 128], strides = [1, 1]} : vector<20x128xf32> to vector<1x128xf32>
    %206 = vector.broadcast %204 : vector<10x1xf32> to vector<10x128xf32>
    %207 = vector.broadcast %205 : vector<1x128xf32> to vector<10x128xf32>
    %208 = arith.mulf %206, %207 : vector<10x128xf32>
    %209 = arith.addf %203, %208 : vector<10x128xf32>
    %210 = vector.extract_strided_slice %95 {offsets = [0, 19], sizes = [10, 1], strides = [1, 1]} : vector<10x20xf32> to vector<10x1xf32>
    %211 = vector.extract_strided_slice %94 {offsets = [19, 0], sizes = [1, 128], strides = [1, 1]} : vector<20x128xf32> to vector<1x128xf32>
    %212 = vector.broadcast %210 : vector<10x1xf32> to vector<10x128xf32>
    %213 = vector.broadcast %211 : vector<1x128xf32> to vector<10x128xf32>
    %214 = arith.mulf %212, %213 : vector<10x128xf32>
    %215 = arith.addf %209, %214 : vector<10x128xf32>
    %216 = vector.broadcast %96 : vector<10x1xf32> to vector<10x128xf32>
    %217 = arith.addf %215, %216 : vector<10x128xf32>
    %cst_9 = arith.constant 0.000000e+00 : f32
    %218 = vector.broadcast %cst_9 : f32 to vector<10x128xf32>
    %219 = arith.maximumf %217, %218 : vector<10x128xf32>
    %c56 = arith.constant 56 : index
    %c0_10 = arith.constant 0 : index
    %220 = vector.load %arg3[%c56, %c0_10] : memref<80x128xf32, #tpu.memory_space<vmem>>, vector<5x10xf32>
    %c56_11 = arith.constant 56 : index
    %c10_12 = arith.constant 10 : index
    %221 = vector.load %arg3[%c56_11, %c10_12] : memref<80x128xf32, #tpu.memory_space<vmem>>, vector<5x1xf32>
    %222 = vector.extract_strided_slice %220 {offsets = [0, 0], sizes = [5, 1], strides = [1, 1]} : vector<5x10xf32> to vector<5x1xf32>
    %223 = vector.extract_strided_slice %219 {offsets = [0, 0], sizes = [1, 128], strides = [1, 1]} : vector<10x128xf32> to vector<1x128xf32>
    %224 = vector.broadcast %222 : vector<5x1xf32> to vector<5x128xf32>
    %225 = vector.broadcast %223 : vector<1x128xf32> to vector<5x128xf32>
    %226 = arith.mulf %224, %225 : vector<5x128xf32>
    %227 = vector.extract_strided_slice %220 {offsets = [0, 1], sizes = [5, 1], strides = [1, 1]} : vector<5x10xf32> to vector<5x1xf32>
    %228 = vector.extract_strided_slice %219 {offsets = [1, 0], sizes = [1, 128], strides = [1, 1]} : vector<10x128xf32> to vector<1x128xf32>
    %229 = vector.broadcast %227 : vector<5x1xf32> to vector<5x128xf32>
    %230 = vector.broadcast %228 : vector<1x128xf32> to vector<5x128xf32>
    %231 = arith.mulf %229, %230 : vector<5x128xf32>
    %232 = arith.addf %226, %231 : vector<5x128xf32>
    %233 = vector.extract_strided_slice %220 {offsets = [0, 2], sizes = [5, 1], strides = [1, 1]} : vector<5x10xf32> to vector<5x1xf32>
    %234 = vector.extract_strided_slice %219 {offsets = [2, 0], sizes = [1, 128], strides = [1, 1]} : vector<10x128xf32> to vector<1x128xf32>
    %235 = vector.broadcast %233 : vector<5x1xf32> to vector<5x128xf32>
    %236 = vector.broadcast %234 : vector<1x128xf32> to vector<5x128xf32>
    %237 = arith.mulf %235, %236 : vector<5x128xf32>
    %238 = arith.addf %232, %237 : vector<5x128xf32>
    %239 = vector.extract_strided_slice %220 {offsets = [0, 3], sizes = [5, 1], strides = [1, 1]} : vector<5x10xf32> to vector<5x1xf32>
    %240 = vector.extract_strided_slice %219 {offsets = [3, 0], sizes = [1, 128], strides = [1, 1]} : vector<10x128xf32> to vector<1x128xf32>
    %241 = vector.broadcast %239 : vector<5x1xf32> to vector<5x128xf32>
    %242 = vector.broadcast %240 : vector<1x128xf32> to vector<5x128xf32>
    %243 = arith.mulf %241, %242 : vector<5x128xf32>
    %244 = arith.addf %238, %243 : vector<5x128xf32>
    %245 = vector.extract_strided_slice %220 {offsets = [0, 4], sizes = [5, 1], strides = [1, 1]} : vector<5x10xf32> to vector<5x1xf32>
    %246 = vector.extract_strided_slice %219 {offsets = [4, 0], sizes = [1, 128], strides = [1, 1]} : vector<10x128xf32> to vector<1x128xf32>
    %247 = vector.broadcast %245 : vector<5x1xf32> to vector<5x128xf32>
    %248 = vector.broadcast %246 : vector<1x128xf32> to vector<5x128xf32>
    %249 = arith.mulf %247, %248 : vector<5x128xf32>
    %250 = arith.addf %244, %249 : vector<5x128xf32>
    %251 = vector.extract_strided_slice %220 {offsets = [0, 5], sizes = [5, 1], strides = [1, 1]} : vector<5x10xf32> to vector<5x1xf32>
    %252 = vector.extract_strided_slice %219 {offsets = [5, 0], sizes = [1, 128], strides = [1, 1]} : vector<10x128xf32> to vector<1x128xf32>
    %253 = vector.broadcast %251 : vector<5x1xf32> to vector<5x128xf32>
    %254 = vector.broadcast %252 : vector<1x128xf32> to vector<5x128xf32>
    %255 = arith.mulf %253, %254 : vector<5x128xf32>
    %256 = arith.addf %250, %255 : vector<5x128xf32>
    %257 = vector.extract_strided_slice %220 {offsets = [0, 6], sizes = [5, 1], strides = [1, 1]} : vector<5x10xf32> to vector<5x1xf32>
    %258 = vector.extract_strided_slice %219 {offsets = [6, 0], sizes = [1, 128], strides = [1, 1]} : vector<10x128xf32> to vector<1x128xf32>
    %259 = vector.broadcast %257 : vector<5x1xf32> to vector<5x128xf32>
    %260 = vector.broadcast %258 : vector<1x128xf32> to vector<5x128xf32>
    %261 = arith.mulf %259, %260 : vector<5x128xf32>
    %262 = arith.addf %256, %261 : vector<5x128xf32>
    %263 = vector.extract_strided_slice %220 {offsets = [0, 7], sizes = [5, 1], strides = [1, 1]} : vector<5x10xf32> to vector<5x1xf32>
    %264 = vector.extract_strided_slice %219 {offsets = [7, 0], sizes = [1, 128], strides = [1, 1]} : vector<10x128xf32> to vector<1x128xf32>
    %265 = vector.broadcast %263 : vector<5x1xf32> to vector<5x128xf32>
    %266 = vector.broadcast %264 : vector<1x128xf32> to vector<5x128xf32>
    %267 = arith.mulf %265, %266 : vector<5x128xf32>
    %268 = arith.addf %262, %267 : vector<5x128xf32>
    %269 = vector.extract_strided_slice %220 {offsets = [0, 8], sizes = [5, 1], strides = [1, 1]} : vector<5x10xf32> to vector<5x1xf32>
    %270 = vector.extract_strided_slice %219 {offsets = [8, 0], sizes = [1, 128], strides = [1, 1]} : vector<10x128xf32> to vector<1x128xf32>
    %271 = vector.broadcast %269 : vector<5x1xf32> to vector<5x128xf32>
    %272 = vector.broadcast %270 : vector<1x128xf32> to vector<5x128xf32>
    %273 = arith.mulf %271, %272 : vector<5x128xf32>
    %274 = arith.addf %268, %273 : vector<5x128xf32>
    %275 = vector.extract_strided_slice %220 {offsets = [0, 9], sizes = [5, 1], strides = [1, 1]} : vector<5x10xf32> to vector<5x1xf32>
    %276 = vector.extract_strided_slice %219 {offsets = [9, 0], sizes = [1, 128], strides = [1, 1]} : vector<10x128xf32> to vector<1x128xf32>
    %277 = vector.broadcast %275 : vector<5x1xf32> to vector<5x128xf32>
    %278 = vector.broadcast %276 : vector<1x128xf32> to vector<5x128xf32>
    %279 = arith.mulf %277, %278 : vector<5x128xf32>
    %280 = arith.addf %274, %279 : vector<5x128xf32>
    %281 = vector.broadcast %221 : vector<5x1xf32> to vector<5x128xf32>
    %282 = arith.addf %280, %281 : vector<5x128xf32>
    %cst_13 = arith.constant 0.000000e+00 : f32
    %283 = vector.broadcast %cst_13 : f32 to vector<5x128xf32>
    %284 = arith.maximumf %282, %283 : vector<5x128xf32>
    %c72 = arith.constant 72 : index
    %c0_14 = arith.constant 0 : index
    %285 = vector.load %arg3[%c72, %c0_14] : memref<80x128xf32, #tpu.memory_space<vmem>>, vector<1x5xf32>
    %c72_15 = arith.constant 72 : index
    %c5 = arith.constant 5 : index
    %286 = vector.load %arg3[%c72_15, %c5] : memref<80x128xf32, #tpu.memory_space<vmem>>, vector<1x1xf32>
    %287 = vector.extract_strided_slice %285 {offsets = [0, 0], sizes = [1, 1], strides = [1, 1]} : vector<1x5xf32> to vector<1x1xf32>
    %288 = vector.extract_strided_slice %284 {offsets = [0, 0], sizes = [1, 128], strides = [1, 1]} : vector<5x128xf32> to vector<1x128xf32>
    %289 = vector.broadcast %287 : vector<1x1xf32> to vector<1x128xf32>
    %290 = arith.mulf %289, %288 : vector<1x128xf32>
    %291 = vector.extract_strided_slice %285 {offsets = [0, 1], sizes = [1, 1], strides = [1, 1]} : vector<1x5xf32> to vector<1x1xf32>
    %292 = vector.extract_strided_slice %284 {offsets = [1, 0], sizes = [1, 128], strides = [1, 1]} : vector<5x128xf32> to vector<1x128xf32>
    %293 = vector.broadcast %291 : vector<1x1xf32> to vector<1x128xf32>
    %294 = arith.mulf %293, %292 : vector<1x128xf32>
    %295 = arith.addf %290, %294 : vector<1x128xf32>
    %296 = vector.extract_strided_slice %285 {offsets = [0, 2], sizes = [1, 1], strides = [1, 1]} : vector<1x5xf32> to vector<1x1xf32>
    %297 = vector.extract_strided_slice %284 {offsets = [2, 0], sizes = [1, 128], strides = [1, 1]} : vector<5x128xf32> to vector<1x128xf32>
    %298 = vector.broadcast %296 : vector<1x1xf32> to vector<1x128xf32>
    %299 = arith.mulf %298, %297 : vector<1x128xf32>
    %300 = arith.addf %295, %299 : vector<1x128xf32>
    %301 = vector.extract_strided_slice %285 {offsets = [0, 3], sizes = [1, 1], strides = [1, 1]} : vector<1x5xf32> to vector<1x1xf32>
    %302 = vector.extract_strided_slice %284 {offsets = [3, 0], sizes = [1, 128], strides = [1, 1]} : vector<5x128xf32> to vector<1x128xf32>
    %303 = vector.broadcast %301 : vector<1x1xf32> to vector<1x128xf32>
    %304 = arith.mulf %303, %302 : vector<1x128xf32>
    %305 = arith.addf %300, %304 : vector<1x128xf32>
    %306 = vector.extract_strided_slice %285 {offsets = [0, 4], sizes = [1, 1], strides = [1, 1]} : vector<1x5xf32> to vector<1x1xf32>
    %307 = vector.extract_strided_slice %284 {offsets = [4, 0], sizes = [1, 128], strides = [1, 1]} : vector<5x128xf32> to vector<1x128xf32>
    %308 = vector.broadcast %306 : vector<1x1xf32> to vector<1x128xf32>
    %309 = arith.mulf %308, %307 : vector<1x128xf32>
    %310 = arith.addf %305, %309 : vector<1x128xf32>
    %311 = vector.broadcast %286 : vector<1x1xf32> to vector<1x128xf32>
    %312 = arith.addf %310, %311 : vector<1x128xf32>
    %313 = arith.negf %312 : vector<1x128xf32>
    %314 = math.exp %313 : vector<1x128xf32>
    %cst_16 = arith.constant 1.000000e+00 : f32
    %315 = vector.broadcast %cst_16 : f32 to vector<1x128xf32>
    %316 = arith.addf %315, %314 : vector<1x128xf32>
    %317 = arith.divf %315, %316 : vector<1x128xf32>
    %c0_17 = arith.constant 0 : index
    %c0_18 = arith.constant 0 : index
    %318 = vector.load %arg2[%c0_17, %c0_18] : memref<1x128xf32, #tpu.memory_space<vmem>>, vector<1x128xf32>
    %319 = arith.cmpf olt, %318, %317 : vector<1x128xf32>
    %320 = arith.extui %319 : vector<1x128xi1> to vector<1x128xi32>
    %321 = arith.sitofp %320 : vector<1x128xi32> to vector<1x128xf32>
    %c0_19 = arith.constant 0 : index
    %c0_20 = arith.constant 0 : index
    %322 = vector.load %arg4[%c0_19, %c0_20] : memref<2x128xf32, #tpu.memory_space<vmem>>, vector<1x128xf32>
    tpu.vector_store %arg4[%c0_19, %c0_20], %317 {strides = array<i32>} : memref<2x128xf32, #tpu.memory_space<vmem>>, vector<1x128xf32>,
    %c1 = arith.constant 1 : index
    %c0_21 = arith.constant 0 : index
    %323 = vector.load %arg4[%c1, %c0_21] : memref<2x128xf32, #tpu.memory_space<vmem>>, vector<1x128xf32>
    tpu.vector_store %arg4[%c1, %c0_21], %321 {strides = array<i32>} : memref<2x128xf32, #tpu.memory_space<vmem>>, vector<1x128xf32>,
    return
  }
  func.func @transform_0(%arg0: i32) -> (i32, i32) {
    %c0_i32 = arith.constant 0 : i32
    %c0_i32_0 = arith.constant 0 : i32
    return %c0_i32, %arg0 : i32, i32
  }
  func.func @transform_1(%arg0: i32) -> (i32, i32) {
    %c0_i32 = arith.constant 0 : i32
    %c0_i32_0 = arith.constant 0 : i32
    return %c0_i32, %arg0 : i32, i32
  }
  func.func @transform_2(%arg0: i32) -> (i32, i32) {
    %c0_i32 = arith.constant 0 : i32
    %c0_i32_0 = arith.constant 0 : i32
    %c0_i32_1 = arith.constant 0 : i32
    return %c0_i32, %c0_i32_0 : i32, i32
  }
  func.func @transform_3(%arg0: i32) -> (i32, i32) {
    %c0_i32 = arith.constant 0 : i32
    %c0_i32_0 = arith.constant 0 : i32
    return %c0_i32, %arg0 : i32, i32
  }
}

</mosaic_0001>

<bundles_post_ra>
// kernel: tpu_custom_call.1
= control target key start
LH: loop header
LB: loop body
LE: loop exit
PB: predicated region body
PF: predicated region fallthrough
CT: control target
= control target key end

     0   :  { %8 = vsyncpa [#allocation3], 0  ;;  %s1471_s0 = inlined_call_operand.hbm [shape: f32[4,128], index: 0, kind: input, shape index: {}]   ;;  %s1472_s1 = inlined_call_operand.vmem [shape: f32[1,128], index: 1, kind: input, shape index: {}]   ;;  %s1473_s2 = inlined_call_operand.hbm [shape: f32[80,128], index: 2, kind: input, shape index: {}]   ;;  %s1474_s3 = inlined_call_operand.hbm [shape: f32[2,128], index: 3, kind: output, shape index: {}]  }
   0x1   :  { %9 = vsyncpa [#allocation6], 0 }
   0x2   :  { %10 = vsyncpa [#allocation4], 0  ;;  %s1048_s12 = smov [#allocation2]   ;;  %s1049_s14 = smov [#allocation5]  }
   0x3   :  { %s17_s13 = sshll.u32 %s1048_s12, 4  ;;  %s28_s15 = sshll.u32 %s1049_s14, 4  ;;  %s18_s13 = int_to_ptr.vmem [resolvable:$true] %s17_s13  ;;  %s29_s15 = int_to_ptr.vmem [resolvable:$true] %s28_s15 }
   0x4   :  { %s990_s16 = scalar_lea.vmem %s18_s13, 64  ;;  %p995_p1 = scmp.lt.s32.totalorder %s18_s13, %s18_s13 }
   0x5   :  { %p991_p0 = scmp.ne.s32.totalorder %s18_s13, %s990_s16  ;;  %p996_p2 = scmp.lt.s32.totalorder %s990_s16, %s990_s16 }
   0x7   :  { %p997_p3 = por %p996_p2, %p995_p1 }
   0x9   :  { %p998_p4 = pnand %p997_p3, %p991_p0 }
   0xb   :  { %1001 = shalt.err (!%p998_p4)
}
   0xc   :  { %20 = dma.hbm_to_vmem [thread:$0]  %s1471_s0, 64, %s18_s13, [#allocation3]  }
   0xd   :  { %s1010_s19 = scalar_lea.vmem %s29_s15, 1280  ;;  %p1015_p6 = scmp.lt.s32.totalorder %s29_s15, %s29_s15 }
   0xe   :  { %p1011_p5 = scmp.ne.s32.totalorder %s29_s15, %s1010_s19  ;;  %p1016_p7 = scmp.lt.s32.totalorder %s1010_s19, %s1010_s19 }
  0x10   :  { %p1017_p8 = por %p1016_p7, %p1015_p6 }
  0x12   :  { %p1018_p9 = pnand %p1017_p8, %p1011_p5 }
  0x14   :  { %1021 = shalt.err (!%p1018_p9)
}
  0x15   :  { %s1050_s20 = smov 128   ;;  %s1051_s21 = smov 8  }
  0x16   :  { %34 = dma.hbm_to_vmem [thread:$0]  %s1473_s2, 1280, %s29_s15, [#allocation6], %s1050_s20, %s1050_s20, %s1051_s21  }
  0x17   :  { %1042 = dma.done.wait [#allocation3], 64  }
  0x18   :  { %1043 = vsyncadd [#allocation3], 4294967232 }
  0x19   :  { %1044 = dma.done.wait [#allocation6], 1280  }
  0x1a   :  { %1045 = vsyncadd [#allocation6], 4294966016  ;;  %v1475_v0 = vmov 2   ;;  %v1053_v1 = vmov 1   ;;  %v42_v2 = vld [vmem:[#allocation5] sm:$0xff]  ;;  %v1103_v3 = vld [vmem:[#allocation5 + $0x10] sm:$0xff]  ;;  %v54_v27 = vlaneseq }
  0x1b   :  { %905 = vset.pattern.permute.xlu0 %v1475_v0  ;;  %904 = vset.pattern.permute.xlu1 %v1053_v1  ;;  %v43_v4 = vld [vmem:[#allocation5 + $0x8] sm:$0x3]  ;;  %v1054_v5 = vmov 5   ;;  %v1055_v6 = vmov 8   ;;  %v1056_v7 = vmov 3   ;;  %v1057_v8 = vmov 0  }
  0x1c   :  { %77 = vperm.xlu0 %905, %v42_v2   ;;  %61 = vperm.xlu1 %904, %v42_v2   ;;  %v1058_v9 = vmov 4   ;;  %v1114_v10 = vld [vmem:[#allocation5 + $0x18] sm:$0xff]  ;;  %v1119_v11 = vld [vmem:[#allocation5 + $0x28] sm:$0xff]  ;;  %v1121_v12 = vld [vmem:[#allocation5 + $0x20] sm:$0xf]  ;;  %v1059_v14 = vmov 6  }
  0x1d   :  { %v1129_v13 = vld [vmem:[#allocation5 + $0x30] sm:$0x3]  ;;  %v1060_v15 = vmov 7   ;;  %v1061_v16 = vmov 9   ;;  %v1062_v17 = vmov 12   ;;  %v1063_v18 = vmov 10  }
  0x1e   :  { %v1064_v19 = vmov 18   ;;  %v1065_v20 = vmov 13   ;;  %v1066_v21 = vmov 15   ;;  %v1186_v24 = vld [vmem:[#allocation5 + $0x38] sm:$0x1f]  ;;  %v1204_v30 = vshrl.u32 %v54_v27, 7 }
  0x1f   :  { %v41_v35 = vld [vmem:[#allocation2] sm:$0xf]  ;;  %s1073_s24 = smov [#allocation7]  }
  0x20   :  { %168 = vperm.xlu0 %905, %v1103_v3   ;;  %65 = vperm.xlu1 %904, %v43_v4   ;;  %v1213_v33 = vsub.s32 0, %v1204_v30  ;;  %v1216_v34 = vsub.s32 1, %v1204_v30  ;;  %v1224_v40 = vsub.s32 2, %v1204_v30  ;;  %v1234_v46 = vsub.s32 3, %v1204_v30  ;;  %s865_s25 = sshll.u32 %s1073_s24, 4  ;;  %s866_s25 = int_to_ptr.vmem [resolvable:$true] %s865_s25 }
  0x21   :  { %v1287_v27 = vsub.s32 4, %v1204_v30  ;;  %s1022_s26 = scalar_lea.vmem %s866_s25, 32  ;;  %p1027_p11 = scmp.lt.s32.totalorder %s866_s25, %s866_s25 }
  0x22   :  { %v57_v37 = vrot.slane %v41_v35, %v1213_v33  ;;  %v71_v39 = vrot.slane %v41_v35, %v1216_v34  ;;  %v87_v45 = vrot.slane %v41_v35, %v1224_v40  ;;  %v103_v51 = vrot.slane %v41_v35, %v1234_v46  ;;  %p1023_p10 = scmp.ne.s32.totalorder %s866_s25, %s1022_s26  ;;  %p1028_p12 = scmp.lt.s32.totalorder %s1022_s26, %s1022_s26 }
  0x24   :  { %914 = vset.pattern.permute.xlu0 %v1054_v5  ;;  %906 = vset.pattern.permute.xlu1 %v1475_v0  ;;  %p1029_p13 = por %p1028_p12, %p1027_p11 }
  0x25   :  { %234 = vperm.xlu0 %914, %v1103_v3   ;;  %81 = vperm.xlu1 %906, %v43_v4  }
  0x26   :  { %p1030_p0 = pnand %p1029_p13, %p1023_p10 }
  0x29   :  { %918 = vset.pattern.permute.xlu0 %v1055_v6  ;;  %907 = vset.pattern.permute.xlu1 %v1056_v7 }
  0x2a   :  { %300 = vperm.xlu0 %918, %v1103_v3   ;;  %93 = vperm.xlu1 %907, %v42_v2  }
  0x2e   :  { %919 = vset.pattern.permute.xlu0 %v1057_v8  ;;  %908 = vset.pattern.permute.xlu1 %v1058_v9 }
  0x2f   :  { %46 = vperm.xlu0 %919, %v42_v2   ;;  %109 = vperm.xlu1 %908, %v42_v2   ;;  %v1259_v2 = vld [vmem:[#allocation5 + $0x48] sm:$0x1] }
  0x33   :  { %51 = vperm.xlu0 %919, %v43_v4   ;;  %113 = vperm.xlu1 %908, %v43_v4  }
  0x37   :  { %125 = vperm.xlu0 %919, %v1103_v3   ;;  %909 = vset.pattern.permute.xlu1 %v1057_v8 }
  0x38   :  { %130 = vperm.xlu1 %909, %v1114_v10  }
  0x3b   :  { %365 = vperm.xlu0 %919, %v1119_v11  }
  0x3c   :  { %135 = vperm.xlu1 %909, %v1121_v12  }
  0x3f   :  { %923 = vset.pattern.permute.xlu0 %v1053_v1 }
  0x40   :  { %146 = vperm.xlu0 %923, %v1103_v3   ;;  %910 = vset.pattern.permute.xlu1 %v1053_v1 }
  0x41   :  { %150 = vperm.xlu1 %910, %v1114_v10  }
  0x44   :  { %384 = vperm.xlu0 %923, %v1129_v13  }
  0x45   :  { %154 = vperm.xlu1 %910, %v1121_v12  }
  0x48   :  { %926 = vset.pattern.permute.xlu0 %v1056_v7 }
  0x49   :  { %97 = vperm.xlu0 %926, %v43_v4   ;;  %911 = vset.pattern.permute.xlu1 %v1475_v0 }
  0x4a   :  { %172 = vperm.xlu1 %911, %v1114_v10  }
  0x4d   :  { %190 = vperm.xlu0 %926, %v1103_v3  }
  0x4e   :  { %176 = vperm.xlu1 %911, %v1121_v12  }
  0x51   :  { %412 = vperm.xlu0 %926, %v1119_v11  }
  0x52   :  { %912 = vset.pattern.permute.xlu1 %v1056_v7 }
  0x53   :  { %194 = vperm.xlu1 %912, %v1114_v10  }
  0x55   :  { %928 = vset.pattern.permute.xlu0 %v1058_v9 }
  0x56   :  { %212 = vperm.xlu0 %928, %v1103_v3  }
  0x57   :  { %198 = vperm.xlu1 %912, %v1121_v12  }
  0x5a   :  { %432 = vperm.xlu0 %928, %v1129_v13  }
  0x5b   :  { %913 = vset.pattern.permute.xlu1 %v1058_v9 }
  0x5c   :  { %216 = vperm.xlu1 %913, %v1114_v10  }
  0x5e   :  { %931 = vset.pattern.permute.xlu0 %v1059_v14 }
  0x5f   :  { %256 = vperm.xlu0 %931, %v1103_v3  }
  0x60   :  { %220 = vperm.xlu1 %913, %v1121_v12  }
  0x63   :  { %460 = vperm.xlu0 %931, %v1119_v11  }
  0x64   :  { %915 = vset.pattern.permute.xlu1 %v1054_v5 }
  0x65   :  { %238 = vperm.xlu1 %915, %v1114_v10  }
  0x67   :  { %933 = vset.pattern.permute.xlu0 %v1060_v15 }
  0x68   :  { %278 = vperm.xlu0 %933, %v1103_v3  }
  0x69   :  { %242 = vperm.xlu1 %915, %v1121_v12  }
  0x6c   :  { %480 = vperm.xlu0 %933, %v1129_v13  }
  0x6d   :  { %916 = vset.pattern.permute.xlu1 %v1059_v14 }
  0x6e   :  { %260 = vperm.xlu1 %916, %v1114_v10  }
  0x70   :  { %936 = vset.pattern.permute.xlu0 %v1061_v16 }
  0x71   :  { %322 = vperm.xlu0 %936, %v1103_v3  }
  0x72   :  { %264 = vperm.xlu1 %916, %v1121_v12  }
  0x75   :  { %508 = vperm.xlu0 %936, %v1119_v11  }
  0x76   :  { %917 = vset.pattern.permute.xlu1 %v1060_v15 }
  0x77   :  { %282 = vperm.xlu1 %917, %v1114_v10  }
  0x79   :  { %940 = vset.pattern.permute.xlu0 %v1062_v17 }
  0x7a   :  { %556 = vperm.xlu0 %940, %v1119_v11  }
  0x7b   :  { %286 = vperm.xlu1 %917, %v1121_v12  }
  0x7e   :  { %941 = vset.pattern.permute.xlu0 %v1063_v18 }
  0x7f   :  { %344 = vperm.xlu0 %941, %v1103_v3   ;;  %920 = vset.pattern.permute.xlu1 %v1055_v6 }
  0x80   :  { %304 = vperm.xlu1 %920, %v1114_v10  }
  0x83   :  { %528 = vperm.xlu0 %941, %v1129_v13  }
  0x84   :  { %308 = vperm.xlu1 %920, %v1121_v12  }
  0x87   :  { %948 = vset.pattern.permute.xlu0 %v1064_v19 }
  0x88   :  { %921 = vset.pattern.permute.xlu1 %v1061_v16  ;;  %652 = vperm.xlu0 %948, %v1119_v11  }
  0x89   :  { %326 = vperm.xlu1 %921, %v1114_v10  }
  0x8c   :  { %951 = vset.pattern.permute.xlu0 %v1065_v20 }
  0x8d   :  { %330 = vperm.xlu1 %921, %v1121_v12   ;;  %576 = vperm.xlu0 %951, %v1129_v13  }
  0x91   :  { %922 = vset.pattern.permute.xlu1 %v1063_v18  ;;  %952 = vset.pattern.permute.xlu0 %v1066_v21 }
  0x92   :  { %348 = vperm.xlu1 %922, %v1114_v10   ;;  %604 = vperm.xlu0 %952, %v1119_v11  }
  0x96   :  { %352 = vperm.xlu1 %922, %v1121_v12   ;;  %608 = vperm.xlu0 %952, %v1129_v13  }
  0x97   :  { %v62_v22 = vpop.permute.xlu1 %61  ;;  %v78_v23 = vpop.permute.xlu0 %77 }
  0x98   :  { %v72_v44 = vmul.f32 %v71_v39, %v62_v22  ;;  %v88_v47 = vmul.f32 %v87_v45, %v78_v23 }
  0x9a   :  { %924 = vset.pattern.permute.xlu1 %v1057_v8  ;;  %957 = vset.pattern.permute.xlu0 %v1057_v8 }
  0x9b   :  { %370 = vperm.xlu1 %924, %v1129_v13   ;;  %v1191_v25 = vpop.permute.xlu1 %65  ;;  %v1193_v26 = vpop.permute.xlu0 %168  ;;  %698 = vperm.xlu0 %957, %v1186_v24  }
  0x9f   :  { %925 = vset.pattern.permute.xlu1 %v1053_v1  ;;  %960 = vset.pattern.permute.xlu0 %v1475_v0 }
  0xa0   :  { %380 = vperm.xlu1 %925, %v1119_v11   ;;  %v1199_v28 = vpop.permute.xlu1 %81  ;;  %v1201_v29 = vpop.permute.xlu0 %234  ;;  %717 = vperm.xlu0 %960, %v1186_v24  }
  0xa4   :  { %927 = vset.pattern.permute.xlu1 %v1475_v0  ;;  %963 = vset.pattern.permute.xlu0 %v1058_v9  ;;  %v1069_v0 = vmov 16  }
  0xa5   :  { %396 = vperm.xlu1 %927, %v1119_v11   ;;  %v94_v31 = vpop.permute.xlu1 %93  ;;  %v1209_v32 = vpop.permute.xlu0 %300  ;;  %737 = vperm.xlu0 %963, %v1186_v24  }
  0xa6   :  { %v104_v55 = vmul.f32 %v103_v51, %v94_v31 }
  0xa9   :  { %400 = vperm.xlu1 %927, %v1129_v13   ;;  %966 = vset.pattern.permute.xlu0 %v1059_v14 }
  0xaa   :  { %v47_v36 = vpop.permute.xlu0 %46  ;;  %v110_v38 = vpop.permute.xlu1 %109  ;;  %757 = vperm.xlu0 %966, %v1186_v24  }
  0xab   :  { %v58_v41 = vmul.f32 %v57_v37, %v47_v36 }
  0xad   :  { %929 = vset.pattern.permute.xlu1 %v1056_v7  ;;  %v74_v48 = vadd.f32 %v72_v44, %v58_v41  ;;  %v73_v41 = vmul.f32 %v71_v39, %v1191_v25 }
  0xae   :  { %v52_v42 = vpop.permute.xlu0 %51  ;;  %416 = vperm.xlu1 %929, %v1129_v13   ;;  %v1228_v43 = vpop.permute.xlu1 %113  ;;  %969 = vset.pattern.permute.xlu0 %v1061_v16 }
  0xaf   :  { %787 = vperm.xlu0 %969, %v1186_v24   ;;  %v90_v52 = vadd.f32 %v88_v47, %v74_v48  ;;  %v59_v31 = vmul.f32 %v57_v37, %v52_v42 }
  0xb1   :  { %v106_v56 = vadd.f32 %v104_v55, %v90_v52  ;;  %v75_v37 = vadd.f32 %v73_v41, %v59_v31 }
  0xb2   :  { %930 = vset.pattern.permute.xlu1 %v1058_v9  ;;  %v126_v49 = vpop.permute.xlu0 %125 }
  0xb3   :  { %428 = vperm.xlu1 %930, %v1119_v11   ;;  %v1238_v50 = vpop.permute.xlu1 %130  ;;  %972 = vset.pattern.permute.xlu0 %v1053_v1  ;;  %v116_v59 = vadd.f32 %v110_v38, %v106_v56  ;;  %v1296_v38 = vsub.s32 5, %v1204_v30 }
  0xb4   :  { %810 = vperm.xlu0 %972, %v1259_v2  }
  0xb5   :  { %v1257_v62 = vmax.f32 %v116_v59, 0.0 }
  0xb6   :  { %v1242_v53 = vpop.permute.xlu0 %365 }
  0xb7   :  { %932 = vset.pattern.permute.xlu1 %v1054_v5  ;;  %v1245_v54 = vpop.permute.xlu1 %135  ;;  %v1267_v4 = vrot.slane %v1257_v62, %v1213_v33  ;;  %v1271_v10 = vrot.slane %v1257_v62, %v1216_v34  ;;  %v1281_v23 = vrot.slane %v1257_v62, %v1224_v40  ;;  %v1310_v52 = vrot.slane %v1257_v62, %v1296_v38 }
  0xb8   :  { %444 = vperm.xlu1 %932, %v1119_v11   ;;  %975 = vset.pattern.permute.xlu0 %v1058_v9  ;;  %v1291_v9 = vrot.slane %v1257_v62, %v1234_v46 }
  0xb9   :  { %v142_v22 = vmul.f32 %v1267_v4, %v126_v49  ;;  %835 = vperm.xlu0 %975, %v1259_v2   ;;  %v183_v44 = vmul.f32 %v1281_v23, %v1193_v26  ;;  %v1306_v49 = vrot.slane %v1257_v62, %v1287_v27  ;;  %v89_v26 = vmul.f32 %v87_v45, %v1199_v28 }
  0xba   :  { %v1067_v28 = vmov 11  }
  0xbb   :  { %v147_v57 = vpop.permute.xlu0 %146  ;;  %v91_v59 = vadd.f32 %v89_v26, %v75_v37 }
  0xbc   :  { %448 = vperm.xlu1 %932, %v1129_v13   ;;  %v1249_v58 = vpop.permute.xlu1 %150  ;;  %v161_v12 = vmul.f32 %v1271_v10, %v147_v57 }
  0xbd   :  { %977 = vset.pattern.permute.xlu0 %v1054_v5 }
  0xbe   :  { %v164_v35 = vadd.f32 %v161_v12, %v142_v22 }
  0xbf   :  { %v1251_v60 = vpop.permute.xlu0 %384 }
  0xc0   :  { %934 = vset.pattern.permute.xlu1 %v1059_v14  ;;  %v1254_v61 = vpop.permute.xlu1 %154  ;;  %v186_v42 = vadd.f32 %v183_v44, %v164_v35 }
  0xc1   :  { %464 = vperm.xlu1 %934, %v1129_v13  }
  0xc4   :  { %v98_v63 = vpop.permute.xlu0 %97 }
  0xc5   :  { %935 = vset.pattern.permute.xlu1 %v1060_v15  ;;  %v1262_v3 = vpop.permute.xlu1 %172  ;;  %v105_v39 = vmul.f32 %v103_v51, %v98_v63  ;;  %v1324_v51 = vsub.s32 6, %v1204_v30 }
  0xc6   :  { %476 = vperm.xlu1 %935, %v1119_v11  }
  0xc7   :  { %v107_v31 = vadd.f32 %v105_v39, %v91_v59  ;;  %v1068_v39 = vmov 14  }
  0xc8   :  { %v191_v14 = vpop.permute.xlu0 %190 }
  0xc9   :  { %v1275_v21 = vpop.permute.xlu1 %176  ;;  %v205_v47 = vmul.f32 %v1291_v9, %v191_v14  ;;  %v249_v14 = vmul.f32 %v1310_v52, %v1201_v29  ;;  %v117_v45 = vadd.f32 %v1228_v43, %v107_v31 }
  0xca   :  { %937 = vset.pattern.permute.xlu1 %v1055_v6 }
  0xcb   :  { %492 = vperm.xlu1 %937, %v1119_v11   ;;  %v208_v55 = vadd.f32 %v205_v47, %v186_v42  ;;  %v119_v29 = vmax.f32 %v117_v45, 0.0  ;;  %v270_v47 = vrot.slane %v1257_v62, %v1324_v51  ;;  %v1333_v42 = vsub.s32 7, %v1204_v30 }
  0xcc   :  { %v1293_v36 = vpop.permute.xlu0 %412  ;;  %v162_v30 = vmul.f32 %v1271_v10, %v1249_v58  ;;  %v143_v45 = vmul.f32 %v1267_v4, %v1238_v50  ;;  %v163_v58 = vmul.f32 %v1271_v10, %v1254_v61  ;;  %v144_v50 = vmul.f32 %v1267_v4, %v1245_v54 }
  0xcd   :  { %v1336_v26 = vrot.slane %v119_v29, %v1213_v33 }
  0xce   :  { %v195_v48 = vpop.permute.xlu1 %194 }
  0xcf   :  { %496 = vperm.xlu1 %937, %v1129_v13   ;;  %v315_v31 = vmul.f32 %v1336_v26, %v1209_v32 }
  0xd1   :  { %v213_v25 = vpop.permute.xlu0 %212 }
  0xd2   :  { %v227_v56 = vmul.f32 %v1306_v49, %v213_v25  ;;  %v199_v57 = vpop.permute.xlu1 %198 }
  0xd3   :  { %938 = vset.pattern.permute.xlu1 %v1063_v18  ;;  %v207_v61 = vmul.f32 %v1291_v9, %v199_v57 }
  0xd4   :  { %v230_v12 = vadd.f32 %v227_v56, %v208_v55  ;;  %524 = vperm.xlu1 %938, %v1119_v11  }
  0xd5   :  { %v1318_v22 = vpop.permute.xlu0 %432 }
  0xd6   :  { %v252_v35 = vadd.f32 %v249_v14, %v230_v12 }
  0xd7   :  { %v217_v41 = vpop.permute.xlu1 %216 }
  0xd8   :  { %939 = vset.pattern.permute.xlu1 %v1067_v28 }
  0xd9   :  { %540 = vperm.xlu1 %939, %v1119_v11  }
  0xda   :  { %v257_v63 = vpop.permute.xlu0 %256 }
  0xdb   :  { %v221_v44 = vpop.permute.xlu1 %220  ;;  %v271_v25 = vmul.f32 %v270_v47, %v257_v63  ;;  %v184_v63 = vmul.f32 %v1281_v23, %v1262_v3  ;;  %v185_v3 = vmul.f32 %v1281_v23, %v1275_v21 }
  0xdd   :  { %942 = vset.pattern.permute.xlu1 %v1065_v20  ;;  %v292_v20 = vrot.slane %v1257_v62, %v1333_v42  ;;  %v274_v56 = vadd.f32 %v271_v25, %v252_v35  ;;  %v165_v25 = vadd.f32 %v162_v30, %v143_v45  ;;  %v166_v30 = vadd.f32 %v163_v58, %v144_v50 }
  0xde   :  { %572 = vperm.xlu1 %942, %v1119_v11   ;;  %v1330_v37 = vpop.permute.xlu0 %460 }
  0xdf   :  { %v188_v54 = vadd.f32 %v185_v3, %v166_v30 }
  0xe0   :  { %v239_v43 = vpop.permute.xlu1 %238 }
  0xe1   :  { %v250_v10 = vmul.f32 %v1310_v52, %v239_v43 }
  0xe2   :  { %943 = vset.pattern.permute.xlu1 %v1068_v39 }
  0xe3   :  { %v279_v55 = vpop.permute.xlu0 %278  ;;  %588 = vperm.xlu1 %943, %v1119_v11  }
  0xe4   :  { %v293_v59 = vmul.f32 %v292_v20, %v279_v55  ;;  %v243_v12 = vpop.permute.xlu1 %242  ;;  %v206_v55 = vmul.f32 %v1291_v9, %v195_v48  ;;  %v336_v9 = vrot.slane %v119_v29, %v1216_v34 }
  0xe6   :  { %v296_v14 = vadd.f32 %v293_v59, %v274_v56  ;;  %v187_v56 = vadd.f32 %v184_v63, %v165_v25  ;;  %v251_v63 = vmul.f32 %v1310_v52, %v243_v12  ;;  %v1070_v25 = vmov 17  }
  0xe7   :  { %944 = vset.pattern.permute.xlu1 %v1061_v16  ;;  %v1351_v62 = vpop.permute.xlu0 %480  ;;  %v228_v16 = vmul.f32 %v1306_v49, %v217_v41  ;;  %v210_v41 = vadd.f32 %v207_v61, %v188_v54  ;;  %v1071_v54 = vmov 19  }
  0xe8   :  { %512 = vperm.xlu1 %944, %v1129_v13   ;;  %v318_v35 = vadd.f32 %v315_v31, %v296_v14  ;;  %v209_v14 = vadd.f32 %v206_v55, %v187_v56  ;;  %v229_v31 = vmul.f32 %v1306_v49, %v221_v44 }
  0xe9   :  { %v261_v32 = vpop.permute.xlu1 %260 }
  0xea   :  { %v231_v4 = vadd.f32 %v228_v16, %v209_v14  ;;  %v272_v21 = vmul.f32 %v270_v47, %v261_v32  ;;  %v232_v43 = vadd.f32 %v229_v31, %v210_v41 }
  0xec   :  { %v323_v59 = vpop.permute.xlu0 %322  ;;  %945 = vset.pattern.permute.xlu1 %v1069_v0  ;;  %v253_v45 = vadd.f32 %v250_v10, %v231_v4  ;;  %v254_v56 = vadd.f32 %v251_v63, %v232_v43  ;;  %v1072_v43 = vmov 20  }
  0xed   :  { %620 = vperm.xlu1 %945, %v1119_v11   ;;  %v265_v48 = vpop.permute.xlu1 %264  ;;  %v337_v49 = vmul.f32 %v336_v9, %v323_v59 }
  0xee   :  { %v275_v58 = vadd.f32 %v272_v21, %v253_v45  ;;  %v273_v55 = vmul.f32 %v270_v47, %v265_v48 }
  0xef   :  { %v340_v16 = vadd.f32 %v337_v49, %v318_v35 }
  0xf0   :  { %v1367_v23 = vpop.permute.xlu0 %508  ;;  %v276_v52 = vadd.f32 %v273_v55, %v254_v56 }
  0xf1   :  { %946 = vset.pattern.permute.xlu1 %v1070_v25 }
  0xf2   :  { %636 = vperm.xlu1 %946, %v1119_v11   ;;  %v283_v57 = vpop.permute.xlu1 %282 }
  0xf3   :  { %v294_v50 = vmul.f32 %v292_v20, %v283_v57 }
  0xf5   :  { %v297_v44 = vadd.f32 %v294_v50, %v275_v58  ;;  %v1372_v32 = vpop.permute.xlu0 %556 }
  0xf6   :  { %947 = vset.pattern.permute.xlu1 %v1067_v28  ;;  %v287_v3 = vpop.permute.xlu1 %286 }
  0xf7   :  { %v295_v12 = vmul.f32 %v292_v20, %v287_v3  ;;  %544 = vperm.xlu1 %947, %v1129_v13  }
  0xf9   :  { %v298_v29 = vadd.f32 %v295_v12, %v276_v52 }
  0xfa   :  { %v345_v30 = vpop.permute.xlu0 %344 }
  0xfb   :  { %v355_v14 = vadd.f32 %v345_v30, %v340_v16  ;;  %949 = vset.pattern.permute.xlu1 %v1062_v17  ;;  %v305_v47 = vpop.permute.xlu1 %304 }
  0xfc   :  { %v316_v61 = vmul.f32 %v1336_v26, %v305_v47  ;;  %560 = vperm.xlu1 %949, %v1129_v13  }
  0xfd   :  { %v1379_v59 = vmax.f32 %v355_v14, 0.0 }
  0xfe   :  { %v319_v10 = vadd.f32 %v316_v61, %v297_v44 }
  0xff   :  { %v309_v28 = vpop.permute.xlu1 %308  ;;  %v376_v20 = vrot.slane %v1379_v59, %v1213_v33  ;;  %v390_v48 = vrot.slane %v1379_v59, %v1216_v34  ;;  %v438_v30 = vrot.slane %v1379_v59, %v1287_v27 }
 0x100   :  { %v317_v35 = vmul.f32 %v1336_v26, %v309_v28  ;;  %950 = vset.pattern.permute.xlu1 %v1071_v54 }
 0x101   :  { %668 = vperm.xlu1 %950, %v1119_v11   ;;  %v392_v17 = vmul.f32 %v390_v48, %v1251_v60  ;;  %v377_v4 = vmul.f32 %v376_v20, %v1242_v53 }
 0x102   :  { %v320_v31 = vadd.f32 %v317_v35, %v298_v29  ;;  %v454_v35 = vrot.slane %v1379_v59, %v1296_v38 }
 0x104   :  { %v327_v21 = vpop.permute.xlu1 %326 }
 0x105   :  { %v338_v41 = vmul.f32 %v336_v9, %v327_v21  ;;  %953 = vset.pattern.permute.xlu1 %v1068_v39 }
 0x106   :  { %592 = vperm.xlu1 %953, %v1129_v13  }
 0x107   :  { %v341_v45 = vadd.f32 %v338_v41, %v319_v10  ;;  %v440_v10 = vmul.f32 %v438_v30, %v1318_v22 }
 0x108   :  { %v331_v63 = vpop.permute.xlu1 %330 }
 0x109   :  { %v339_v57 = vmul.f32 %v336_v9, %v331_v63  ;;  %v486_v63 = vrot.slane %v1379_v59, %v1333_v42 }
 0x10a   :  { %954 = vset.pattern.permute.xlu1 %v1072_v43 }
 0x10b   :  { %684 = vperm.xlu1 %954, %v1119_v11   ;;  %v342_v26 = vadd.f32 %v339_v57, %v320_v31 }
 0x10d   :  { %v349_v58 = vpop.permute.xlu1 %348 }
 0x10e   :  { %v1392_v55 = vadd.f32 %v349_v58, %v341_v45 }
 0x10f   :  { %955 = vset.pattern.permute.xlu1 %v1069_v0  ;;  %v406_v0 = vrot.slane %v1379_v59, %v1224_v40 }
 0x110   :  { %624 = vperm.xlu1 %955, %v1129_v13  }
 0x111   :  { %v353_v53 = vpop.permute.xlu1 %352 }
 0x112   :  { %v1396_v60 = vadd.f32 %v353_v53, %v342_v26 }
 0x114   :  { %956 = vset.pattern.permute.xlu1 %v1070_v25  ;;  %v422_v25 = vrot.slane %v1379_v59, %v1234_v46 }
 0x115   :  { %640 = vperm.xlu1 %956, %v1129_v13  }
 0x116   :  { %v371_v39 = vpop.permute.xlu1 %370 }
 0x117   :  { %v378_v9 = vmul.f32 %v376_v20, %v371_v39 }
 0x119   :  { %v394_v50 = vadd.f32 %v392_v17, %v378_v9  ;;  %958 = vset.pattern.permute.xlu1 %v1053_v1  ;;  %v423_v1 = vmul.f32 %v422_v25, %v1293_v36 }
 0x11a   :  { %707 = vperm.xlu1 %958, %v1186_v24  }
 0x11b   :  { %v381_v11 = vpop.permute.xlu1 %380 }
 0x11c   :  { %v391_v56 = vmul.f32 %v390_v48, %v381_v11 }
 0x11e   :  { %v393_v49 = vadd.f32 %v391_v56, %v377_v4  ;;  %959 = vset.pattern.permute.xlu1 %v1064_v19 }
 0x11f   :  { %656 = vperm.xlu1 %959, %v1129_v13  }
 0x120   :  { %v397_v44 = vpop.permute.xlu1 %396 }
 0x121   :  { %v407_v3 = vmul.f32 %v406_v0, %v397_v44 }
 0x123   :  { %v409_v52 = vadd.f32 %v407_v3, %v393_v49  ;;  %961 = vset.pattern.permute.xlu1 %v1071_v54  ;;  %v470_v54 = vrot.slane %v1379_v59, %v1324_v51  ;;  %v1476_v49 = vmov 2  }
 0x124   :  { %672 = vperm.xlu1 %961, %v1129_v13   ;;  %v401_v12 = vpop.permute.xlu1 %400 }
 0x125   :  { %v408_v29 = vmul.f32 %v406_v0, %v401_v12  ;;  %v425_v16 = vadd.f32 %v423_v1, %v409_v52  ;;  %v471_v31 = vmul.f32 %v470_v54, %v1330_v37  ;;  %v488_v37 = vmul.f32 %v486_v63, %v1351_v62 }
 0x127   :  { %v410_v19 = vadd.f32 %v408_v29, %v394_v50 }
 0x128   :  { %962 = vset.pattern.permute.xlu1 %v1056_v7 }
 0x129   :  { %727 = vperm.xlu1 %962, %v1186_v24   ;;  %v417_v14 = vpop.permute.xlu1 %416 }
 0x12a   :  { %v424_v47 = vmul.f32 %v422_v25, %v417_v14  ;;  %v529_v25 = vpop.permute.xlu0 %528 }
 0x12c   :  { %v426_v61 = vadd.f32 %v424_v47, %v410_v19 }
 0x12d   :  { %964 = vset.pattern.permute.xlu1 %v1072_v43 }
 0x12e   :  { %688 = vperm.xlu1 %964, %v1129_v13   ;;  %v429_v36 = vpop.permute.xlu1 %428  ;;  %v442_v28 = vadd.f32 %v440_v10, %v426_v61  ;;  %v653_v12 = vpop.permute.xlu0 %652 }
 0x12f   :  { %v439_v20 = vmul.f32 %v438_v30, %v429_v36 }
 0x131   :  { %v441_v48 = vadd.f32 %v439_v20, %v425_v16 }
 0x132   :  { %965 = vset.pattern.permute.xlu1 %v1054_v5  ;;  %v577_v61 = vpop.permute.xlu0 %576 }
 0x133   :  { %747 = vperm.xlu1 %965, %v1186_v24   ;;  %v445_v17 = vpop.permute.xlu1 %444 }
 0x134   :  { %v455_v4 = vmul.f32 %v454_v35, %v445_v17 }
 0x136   :  { %v457_v22 = vadd.f32 %v455_v4, %v441_v48 }
 0x137   :  { %967 = vset.pattern.permute.xlu1 %v1060_v15  ;;  %v449_v13 = vpop.permute.xlu1 %448  ;;  %v359_v15 = vmax.f32 %v1392_v55, 0.0 }
 0x138   :  { %v456_v21 = vmul.f32 %v454_v35, %v449_v13  ;;  %767 = vperm.xlu1 %967, %v1186_v24   ;;  %v473_v41 = vadd.f32 %v471_v31, %v457_v22 }
 0x139   :  { %v502_v59 = vrot.slane %v359_v15, %v1213_v33  ;;  %v534_v44 = vrot.slane %v359_v15, %v1224_v40  ;;  %v566_v1 = vrot.slane %v359_v15, %v1287_v27  ;;  %v582_v14 = vrot.slane %v359_v15, %v1296_v38 }
 0x13a   :  { %v458_v45 = vadd.f32 %v456_v21, %v442_v28  ;;  %v614_v28 = vrot.slane %v359_v15, %v1333_v42  ;;  %v598_v20 = vrot.slane %v359_v15, %v1324_v51 }
 0x13b   :  { %v567_v30 = vmul.f32 %v566_v1, %v1372_v32  ;;  %v536_v31 = vmul.f32 %v534_v44, %v529_v25 }
 0x13c   :  { %968 = vset.pattern.permute.xlu1 %v1055_v6  ;;  %v465_v57 = vpop.permute.xlu1 %464  ;;  %v518_v6 = vrot.slane %v359_v15, %v1216_v34 }
 0x13d   :  { %v472_v43 = vmul.f32 %v470_v54, %v465_v57  ;;  %777 = vperm.xlu1 %968, %v1186_v24   ;;  %v605_v54 = vpop.permute.xlu0 %604 }
 0x13e   :  { %v519_v55 = vmul.f32 %v518_v6, %v1367_v23  ;;  %v550_v23 = vrot.slane %v359_v15, %v1234_v46 }
 0x13f   :  { %v474_v26 = vadd.f32 %v472_v43, %v458_v45 }
 0x141   :  { %970 = vset.pattern.permute.xlu1 %v1063_v18  ;;  %v477_v58 = vpop.permute.xlu1 %476  ;;  %v490_v53 = vadd.f32 %v488_v37, %v474_v26 }
 0x142   :  { %v487_v39 = vmul.f32 %v486_v63, %v477_v58  ;;  %797 = vperm.xlu1 %970, %v1186_v24  }
 0x144   :  { %v489_v9 = vadd.f32 %v487_v39, %v473_v41 }
 0x146   :  { %971 = vset.pattern.permute.xlu1 %v1057_v8  ;;  %v493_v50 = vpop.permute.xlu1 %492 }
 0x147   :  { %v503_v11 = vmul.f32 %v502_v59, %v493_v50  ;;  %805 = vperm.xlu1 %971, %v1259_v2  }
 0x149   :  { %v505_v62 = vadd.f32 %v503_v11, %v489_v9  ;;  %v584_v11 = vmul.f32 %v582_v14, %v577_v61 }
 0x14a   :  { %v497_v18 = vpop.permute.xlu1 %496 }
 0x14b   :  { %v504_v56 = vmul.f32 %v502_v59, %v497_v18  ;;  %973 = vset.pattern.permute.xlu1 %v1476_v49  ;;  %v521_v0 = vadd.f32 %v519_v55, %v505_v62 }
 0x14c   :  { %819 = vperm.xlu1 %973, %v1259_v2  }
 0x14d   :  { %v506_v24 = vadd.f32 %v504_v56, %v490_v53 }
 0x14f   :  { %v525_v3 = vpop.permute.xlu1 %524 }
 0x150   :  { %v535_v8 = vmul.f32 %v534_v44, %v525_v3  ;;  %974 = vset.pattern.permute.xlu1 %v1056_v7 }
 0x151   :  { %827 = vperm.xlu1 %974, %v1259_v2  }
 0x152   :  { %v537_v52 = vadd.f32 %v535_v8, %v521_v0 }
 0x154   :  { %v541_v29 = vpop.permute.xlu1 %540 }
 0x155   :  { %v551_v16 = vmul.f32 %v550_v23, %v541_v29  ;;  %976 = vset.pattern.permute.xlu1 %v1054_v5  ;;  %v615_v5 = vmul.f32 %v614_v28, %v605_v54 }
 0x156   :  { %843 = vperm.xlu1 %976, %v1259_v2   ;;  %v360_v2 = vmax.f32 %v1396_v60, 0.0 }
 0x157   :  { %v553_v19 = vadd.f32 %v551_v16, %v537_v52 }
 0x158   :  { %v630_v21 = vrot.slane %v360_v2, %v1213_v33  ;;  %v646_v43 = vrot.slane %v360_v2, %v1216_v34  ;;  %v662_v26 = vrot.slane %v360_v2, %v1224_v40  ;;  %v678_v55 = vrot.slane %v360_v2, %v1234_v46 }
 0x159   :  { %v573_v7 = vpop.permute.xlu1 %572  ;;  %v569_v47 = vadd.f32 %v567_v30, %v553_v19 }
 0x15a   :  { %v583_v10 = vmul.f32 %v582_v14, %v573_v7  ;;  %v663_v53 = vmul.f32 %v662_v26, %v653_v12 }
 0x15c   :  { %v585_v36 = vadd.f32 %v583_v10, %v569_v47 }
 0x15e   :  { %v589_v48 = vpop.permute.xlu1 %588 }
 0x15f   :  { %v599_v35 = vmul.f32 %v598_v20, %v589_v48 }
 0x161   :  { %v601_v17 = vadd.f32 %v599_v35, %v585_v36 }
 0x163   :  { %v513_v4 = vpop.permute.xlu1 %512  ;;  %v617_v32 = vadd.f32 %v615_v5, %v601_v17 }
 0x164   :  { %v520_v22 = vmul.f32 %v518_v6, %v513_v4 }
 0x166   :  { %v522_v13 = vadd.f32 %v520_v22, %v506_v24  ;;  %v609_v24 = vpop.permute.xlu0 %608 }
 0x167   :  { %v616_v3 = vmul.f32 %v614_v28, %v609_v24 }
 0x168   :  { %v621_v41 = vpop.permute.xlu1 %620  ;;  %v538_v45 = vadd.f32 %v536_v31, %v522_v13 }
 0x169   :  { %v631_v63 = vmul.f32 %v630_v21, %v621_v41 }
 0x16a   :  { %v699_v48 = vpop.permute.xlu0 %698 }
 0x16b   :  { %v633_v57 = vadd.f32 %v631_v63, %v617_v32 }
 0x16d   :  { %v637_v37 = vpop.permute.xlu1 %636 }
 0x16e   :  { %v647_v15 = vmul.f32 %v646_v43, %v637_v37  ;;  %v718_v32 = vpop.permute.xlu0 %717 }
 0x170   :  { %v649_v58 = vadd.f32 %v647_v15, %v633_v57 }
 0x172   :  { %v545_v60 = vpop.permute.xlu1 %544  ;;  %v665_v39 = vadd.f32 %v663_v53, %v649_v58 }
 0x173   :  { %v552_v9 = vmul.f32 %v550_v23, %v545_v60 }
 0x175   :  { %v554_v59 = vadd.f32 %v552_v9, %v538_v45 }
 0x177   :  { %v561_v6 = vpop.permute.xlu1 %560 }
 0x178   :  { %v568_v50 = vmul.f32 %v566_v1, %v561_v6 }
 0x17a   :  { %v570_v62 = vadd.f32 %v568_v50, %v554_v59 }
 0x17c   :  { %v669_v18 = vpop.permute.xlu1 %668  ;;  %v586_v56 = vadd.f32 %v584_v11, %v570_v62 }
 0x17d   :  { %v679_v49 = vmul.f32 %v678_v55, %v669_v18 }
 0x17f   :  { %v681_v0 = vadd.f32 %v679_v49, %v665_v39 }
 0x181   :  { %v593_v25 = vpop.permute.xlu1 %592 }
 0x182   :  { %v600_v44 = vmul.f32 %v598_v20, %v593_v25 }
 0x184   :  { %v602_v8 = vadd.f32 %v600_v44, %v586_v56 }
 0x186   :  { %v685_v52 = vpop.permute.xlu1 %684  ;;  %v618_v12 = vadd.f32 %v616_v3, %v602_v8 }
 0x187   :  { %v691_v7 = vadd.f32 %v685_v52, %v681_v0 }
 0x189   :  { %v693_v61 = vmax.f32 %v691_v7, 0.0 }
 0x18b   :  { %v625_v29 = vpop.permute.xlu1 %624  ;;  %v704_v35 = vrot.slane %v693_v61, %v1213_v33  ;;  %v713_v28 = vrot.slane %v693_v61, %v1216_v34  ;;  %v723_v4 = vrot.slane %v693_v61, %v1224_v40  ;;  %v733_v13 = vrot.slane %v693_v61, %v1234_v46 }
 0x18c   :  { %v632_v23 = vmul.f32 %v630_v21, %v625_v29  ;;  %v743_v45 = vrot.slane %v693_v61, %v1287_v27  ;;  %v753_v15 = vrot.slane %v693_v61, %v1296_v38  ;;  %v763_v53 = vrot.slane %v693_v61, %v1324_v51 }
 0x18d   :  { %v705_v2 = vmul.f32 %v704_v35, %v699_v48  ;;  %v724_v21 = vmul.f32 %v723_v4, %v718_v32  ;;  %v773_v27 = vrot.slane %v693_v61, %v1333_v42  ;;  %v1074_v4 = vmov 0.0  }
 0x18e   :  { %v634_v16 = vadd.f32 %v632_v23, %v618_v12 }
 0x190   :  { %v641_v19 = vpop.permute.xlu1 %640 }
 0x191   :  { %v648_v1 = vmul.f32 %v646_v43, %v641_v19  ;;  %v738_v43 = vpop.permute.xlu0 %737 }
 0x192   :  { %v744_v37 = vmul.f32 %v743_v45, %v738_v43 }
 0x193   :  { %v650_v30 = vadd.f32 %v648_v1, %v634_v16 }
 0x195   :  { %v708_v14 = vpop.permute.xlu1 %707  ;;  %v758_v9 = vpop.permute.xlu0 %757 }
 0x196   :  { %v714_v5 = vmul.f32 %v713_v28, %v708_v14  ;;  %v764_v46 = vmul.f32 %v763_v53, %v758_v9 }
 0x198   :  { %v715_v31 = vadd.f32 %v714_v5, %v705_v2 }
 0x199   :  { %v788_v38 = vpop.permute.xlu0 %787 }
 0x19a   :  { %v657_v47 = vpop.permute.xlu1 %656  ;;  %v725_v63 = vadd.f32 %v724_v21, %v715_v31 }
 0x19b   :  { %v664_v10 = vmul.f32 %v662_v26, %v657_v47 }
 0x19d   :  { %v666_v36 = vadd.f32 %v664_v10, %v650_v30  ;;  %v811_v29 = vpop.permute.xlu0 %810 }
 0x19f   :  { %v673_v20 = vpop.permute.xlu1 %672 }
 0x1a0   :  { %v680_v54 = vmul.f32 %v678_v55, %v673_v20 }
 0x1a1   :  { %v836_v14 = vpop.permute.xlu0 %835 }
 0x1a2   :  { %v682_v17 = vadd.f32 %v680_v54, %v666_v36 }
 0x1a4   :  { %v728_v22 = vpop.permute.xlu1 %727 }
 0x1a5   :  { %v734_v41 = vmul.f32 %v733_v13, %v728_v22 }
 0x1a7   :  { %v735_v26 = vadd.f32 %v734_v41, %v725_v63 }
 0x1a9   :  { %v689_v57 = vpop.permute.xlu1 %688  ;;  %v745_v60 = vadd.f32 %v744_v37, %v735_v26 }
 0x1aa   :  { %v692_v40 = vadd.f32 %v689_v57, %v682_v17  ;;  %v853_v17 = vld [vmem:[%s1472_s1] sm:$0x1] }
 0x1ac   :  { %v694_v6 = vmax.f32 %v692_v40, 0.0 }
 0x1ae   :  { %v748_v58 = vpop.permute.xlu1 %747  ;;  %v793_v55 = vrot.slane %v694_v6, %v1216_v34  ;;  %v783_v18 = vrot.slane %v694_v6, %v1213_v33 }
 0x1af   :  { %v754_v39 = vmul.f32 %v753_v15, %v748_v58 }
 0x1b0   :  { %v794_v0 = vmul.f32 %v793_v55, %v788_v38 }
 0x1b1   :  { %v755_v59 = vadd.f32 %v754_v39, %v745_v60 }
 0x1b3   :  { %v768_v50 = vpop.permute.xlu1 %767  ;;  %v765_v11 = vadd.f32 %v764_v46, %v755_v59 }
 0x1b4   :  { %v774_v62 = vmul.f32 %v773_v27, %v768_v50 }
 0x1b6   :  { %v775_v49 = vadd.f32 %v774_v62, %v765_v11 }
 0x1b8   :  { %v778_v56 = vpop.permute.xlu1 %777 }
 0x1b9   :  { %v784_v51 = vmul.f32 %v783_v18, %v778_v56 }
 0x1bb   :  { %v785_v24 = vadd.f32 %v784_v51, %v775_v49 }
 0x1bd   :  { %v798_v25 = vpop.permute.xlu1 %797  ;;  %v795_v44 = vadd.f32 %v794_v0, %v785_v24 }
 0x1bf   :  { %v800_v3 = vadd.f32 %v798_v25, %v795_v44 }
 0x1c1   :  { %v801_v8 = vmax.f32 %v800_v3, 0.0 }
 0x1c2   :  { %v806_v52 = vpop.permute.xlu1 %805 }
 0x1c3   :  { %v814_v12 = vrot.slane %v801_v8, 1  ;;  %v808_v23 = vmul.f32 %v806_v52, %v801_v8  ;;  %v822_v19 = vrot.slane %v801_v8, 2  ;;  %v838_v33 = vrot.slane %v801_v8, 4 }
 0x1c4   :  { %v830_v30 = vrot.slane %v801_v8, 3 }
 0x1c5   :  { %v816_v42 = vmul.f32 %v814_v12, %v811_v29  ;;  %v840_v10 = vmul.f32 %v838_v33, %v836_v14 }
 0x1c7   :  { %v820_v16 = vpop.permute.xlu1 %819  ;;  %v817_v34 = vadd.f32 %v816_v42, %v808_v23 }
 0x1c8   :  { %v824_v1 = vmul.f32 %v822_v19, %v820_v16 }
 0x1ca   :  { %v825_v47 = vadd.f32 %v824_v1, %v817_v34 }
 0x1cc   :  { %v828_v7 = vpop.permute.xlu1 %827 }
 0x1cd   :  { %v832_v61 = vmul.f32 %v830_v30, %v828_v7 }
 0x1cf   :  { %v833_v36 = vadd.f32 %v832_v61, %v825_v47 }
 0x1d1   :  { %v844_v48 = vpop.permute.xlu1 %843  ;;  %v841_v35 = vadd.f32 %v840_v10, %v833_v36 }
 0x1d3   :  { %v846_v28 = vadd.f32 %v844_v48, %v841_v35 }
 0x1d5   :  { %v875_v20 = vmul.f32 -1.442695, %v846_v28 }
 0x1d7   :  { %978 = vpow2.f32 %v875_v20 }
 0x1e4   :  { %v979_v54 = vpop.eup %978 }
 0x1e5   :  { %v850_v5 = vadd.f32 1.0, %v979_v54 }
 0x1e7   :  { %980 = vrcp.f32 %v850_v5 }
 0x1f4   :  { %v981_v2 = vpop.eup %980 }
 0x1f5   :  { %857 = vst [vmem:[#allocation7] sm:$0x1] %v981_v2  ;;  %vm854_vm0 = vcmp.lt.f32.partialorder %v853_v17, %v981_v2 }
 0x1f6   :  { %v876_v32 = vsel %vm854_vm0, 1.0, %v1074_v4 }
 0x1f7   :  { %858 = vst [vmem:[#allocation7 + $0x1] sm:$0x1] %v876_v32 }
 0x1f8   :  { %1033 = shalt.err (!%p1030_p0)
}
 0x1f9   :  { %868 = dma.vmem_to_hbm [thread:$0]  %s866_s25, 32, %s1474_s3, [#allocation4]  }
 0x1fa   :  { %1046 = dma.done.wait [#allocation4], 32  }
 0x1fb   :  { %1047 = vsyncadd [#allocation4], 4294967264 }
 0x1fc   :  { %872 = vsyncpa [#allocation3], 1 }
 0x1fd   :  { %873 = vsyncpa [#allocation6], 1 }
 0x1fe   :  { %874 = vsyncpa [#allocation4], 1 }

</bundles_post_ra>
